<compile_context>
chip_gen: v7x
topology: tpu7x:2x2x1
jax: 0.10.0
libtpu: 0.0.40
codegen_flags: <defaults>
</compile_context>

<pallas_src>
import functools

import jax
import jax.numpy as jnp
from jax.experimental import pallas as pl
from jax.experimental.pallas import tpu as pltpu

# Architecture constants (hidden sizes from the PyTorch module; the narrow
# 64-wide layer and the action head are zero-padded to the 128-lane width).
H1, H2, H3 = 128, 256, 128
H4 = 64
H4_PAD = 128            # layer-4 width padded to a full lane
OUT_PAD = 128           # action_dim padded to a full lane (requires action_dim <= 128)
# Static lane offsets into the concatenated bias buffer (1, 768).
_B1, _B2, _B3, _B4, _B5, _BEND = 0, 128, 384, 512, 640, 768


def _actor_kernel(x_ref, w1_ref, w2_ref, w3_ref, w45_ref, b_ref, o_ref):
    """One batch tile of the full MLP; weights/biases resident in VMEM."""

    def leaky_relu(h):                       # negative_slope = 0.1, f32 math
        return jnp.maximum(h, 0.1 * h)

    x = x_ref[...]                           # already bf16 (packed in wrapper)

    h = jnp.dot(x, w1_ref[...], preferred_element_type=jnp.float32) + b_ref[:, _B1:_B2]
    h = leaky_relu(h).astype(jnp.bfloat16)

    h = jnp.dot(h, w2_ref[...], preferred_element_type=jnp.float32) + b_ref[:, _B2:_B3]
    h = leaky_relu(h).astype(jnp.bfloat16)

    h = jnp.dot(h, w3_ref[...], preferred_element_type=jnp.float32) + b_ref[:, _B3:_B4]
    h = leaky_relu(h).astype(jnp.bfloat16)

    h = jnp.dot(h, w45_ref[0], preferred_element_type=jnp.float32) + b_ref[:, _B4:_B5]
    h = leaky_relu(h).astype(jnp.bfloat16)

    logits = jnp.dot(h, w45_ref[1], preferred_element_type=jnp.float32) + b_ref[:, _B5:_BEND]

    # sigmoid: exp on the EUP, approximate reciprocal also on the EUP (free slots).
    o_ref[...] = pl.reciprocal(1.0 + jnp.exp(-logits), approx=True)


def _choose_block_b(batch):
    """Pick the batch tile: minimal grid steps, even split for v7x megacore."""
    if batch <= 128:
        return pl.cdiv(batch, 8) * 8      # one grid step covers the whole batch
    if batch <= 512:
        return 128                        # 2-4 steps of 128 rows (even for 2 TCs)
    return 256                            # big batches: 256-row tiles


@functools.partial(jax.jit, static_argnames=("action_dim",))
def actor_forward(state, packed, action_dim):
    """Batched actor forward; pad, pallas_call, and slice all inside one jit."""
    B, S = state.shape
    block_b = _choose_block_b(B)
    B_pad = pl.cdiv(B, block_b) * block_b

    # bf16 input packing: halves the per-step input DMA, MXU feed stays bf16.
    x = state.astype(jnp.bfloat16)
    if B_pad != B:
        x = jnp.pad(x, ((0, B_pad - B), (0, 0)))

    w1, w2, w3 = packed["w1"], packed["w2"], packed["w3"]
    w45, b_cat = packed["w45"], packed["b_cat"]

    weight_bytes = w1.nbytes + w2.nbytes + w3.nbytes + w45.nbytes + b_cat.nbytes
    cost = pl.CostEstimate(
        flops=2 * B_pad * (S * H1 + H1 * H2 + H2 * H3 + H3 * H4_PAD + H4_PAD * OUT_PAD),
        transcendentals=2 * B_pad * OUT_PAD,            # exp + approx reciprocal
        bytes_accessed=weight_bytes + x.nbytes + B_pad * OUT_PAD * 4,
    )

    out = pl.pallas_call(
        _actor_kernel,
        out_shape=jax.ShapeDtypeStruct((B_pad, OUT_PAD), jnp.float32),
        grid=(B_pad // block_b,),
        in_specs=[
            pl.BlockSpec((block_b, S), lambda i: (i, 0)),          # state tile
            pl.BlockSpec((S, H1), lambda i: (0, 0)),               # resident weights
            pl.BlockSpec((H1, H2), lambda i: (0, 0)),
            pl.BlockSpec((H2, H3), lambda i: (0, 0)),
            pl.BlockSpec((2, H4_PAD, OUT_PAD), lambda i: (0, 0, 0)),
            pl.BlockSpec((1, _BEND), lambda i: (0, 0)),            # packed biases
        ],
        out_specs=pl.BlockSpec((block_b, OUT_PAD), lambda i: (i, 0)),
        compiler_params=pltpu.CompilerParams(
            dimension_semantics=("parallel",)),
        cost_estimate=cost,
    )(x, w1, w2, w3, w45, b_cat)

    return out[:B, :action_dim]


def init_actor_params(key, state_dim, action_dim):
    """Deterministic synthetic init (PyTorch-like uniform fan-in scaling), f32."""
    dims = [state_dim, H1, H2, H3, H4, action_dim]
    params = {}
    for i in range(5):
        fan_in, fan_out = dims[i], dims[i + 1]
        key, kw, kb = jax.random.split(key, 3)
        bound = 1.0 / jnp.sqrt(jnp.float32(fan_in))
        params[f"w{i+1}"] = jax.random.uniform(
            kw, (fan_in, fan_out), jnp.float32, -bound, bound)
        params[f"b{i+1}"] = jax.random.uniform(
            kb, (1, fan_out), jnp.float32, -bound, bound)
    return params


def pack_actor_params(params, state_dim, action_dim):
    """Cast weights to bf16, lane-pad the narrow layers, pack biases into one buffer."""
    assert action_dim <= OUT_PAD, "action_dim > 128 not supported by this packing"
    w1 = params["w1"].astype(jnp.bfloat16)                           # (S, 128)
    w2 = params["w2"].astype(jnp.bfloat16)                           # (128, 256)
    w3 = params["w3"].astype(jnp.bfloat16)                           # (256, 128)
    w4p = jnp.zeros((H3, H4_PAD), jnp.bfloat16).at[:, :H4].set(
        params["w4"].astype(jnp.bfloat16))                           # (128, 128)
    w5p = jnp.zeros((H4_PAD, OUT_PAD), jnp.bfloat16).at[:H4, :action_dim].set(
        params["w5"].astype(jnp.bfloat16))                           # (128, 128)
    w45 = jnp.stack([w4p, w5p], axis=0)                              # (2, 128, 128)

    b_cat = jnp.zeros((1, _BEND), jnp.float32)
    b_cat = b_cat.at[:, _B1:_B1 + H1].set(params["b1"])
    b_cat = b_cat.at[:, _B2:_B2 + H2].set(params["b2"])
    b_cat = b_cat.at[:, _B3:_B3 + H3].set(params["b3"])
    b_cat = b_cat.at[:, _B4:_B4 + H4].set(params["b4"])
    b_cat = b_cat.at[:, _B5:_B5 + action_dim].set(params["b5"])

    return {"w1": w1, "w2": w2, "w3": w3, "w45": w45, "b_cat": b_cat}


def actor_reference(state, packed, action_dim):
    """Pure-JAX reference mirroring the kernel's bf16-input / f32-accum math."""
    def leaky(h):
        return jnp.maximum(h, 0.1 * h)

    def mm(x, w):
        return jnp.dot(x.astype(jnp.bfloat16), w, preferred_element_type=jnp.float32)

    b = packed["b_cat"]
    h = leaky(mm(state, packed["w1"]) + b[:, _B1:_B2])
    h = leaky(mm(h, packed["w2"]) + b[:, _B2:_B3])
    h = leaky(mm(h, packed["w3"]) + b[:, _B3:_B4])
    h = leaky(mm(h, packed["w45"][0]) + b[:, _B4:_B5])
    logits = mm(h, packed["w45"][1]) + b[:, _B5:_BEND]
    return jax.nn.sigmoid(logits)[:, :action_dim]


if __name__ == "__main__":
    key = jax.random.PRNGKey(0)

    batch = 256          # 2 grid steps of 128 rows -> even split across v7x TCs
    state_dim = 32
    action_dim = 8

    key, k_state, k_params = jax.random.split(key, 3)
    state = jax.random.normal(k_state, (batch, state_dim), jnp.float32)
    raw_params = init_actor_params(k_params, state_dim, action_dim)
    packed = pack_actor_params(raw_params, state_dim, action_dim)

    out = actor_forward(state, packed, action_dim)
    out = jax.block_until_ready(out)

    ref = actor_reference(state, packed, action_dim)
    assert out.shape == (batch, action_dim), out.shape
    max_diff = jnp.max(jnp.abs(out - ref))
    assert jnp.allclose(out, ref, atol=5e-3, rtol=5e-3), f"mismatch vs reference: {max_diff}"

    print("KERNEL_OK")
</pallas_src>

<mosaic_0001>
module attributes {stable_mosaic.version = 11 : i64} {
  func.func @_actor_kernel(%arg0: i32, %arg1: memref<128x32xbf16, #tpu.memory_space<vmem>>, %arg2: memref<32x128xbf16, #tpu.memory_space<vmem>>, %arg3: memref<128x256xbf16, #tpu.memory_space<vmem>>, %arg4: memref<256x128xbf16, #tpu.memory_space<vmem>>, %arg5: memref<2x128x128xbf16, #tpu.memory_space<vmem>>, %arg6: memref<1x768xf32, #tpu.memory_space<vmem>>, %arg7: memref<128x128xf32, #tpu.memory_space<vmem>>) attributes {dimension_semantics = [#tpu.dimension_semantics<parallel>], iteration_bounds = array<i64: 2>, scalar_prefetch = 0 : i64, scratch_operands = 0 : i64, tpu.core_type = #tpu.core_type<tc>, window_params = [{transform_indices = @transform_0, window_bounds = array<i64: 128, 32>}, {pipeline_mode = #tpu.pipeline_mode<synchronous>, transform_indices = @transform_1, window_bounds = array<i64: 32, 128>}, {pipeline_mode = #tpu.pipeline_mode<synchronous>, transform_indices = @transform_2, window_bounds = array<i64: 128, 256>}, {pipeline_mode = #tpu.pipeline_mode<synchronous>, transform_indices = @transform_3, window_bounds = array<i64: 256, 128>}, {pipeline_mode = #tpu.pipeline_mode<synchronous>, transform_indices = @transform_4, window_bounds = array<i64: 2, 128, 128>}, {pipeline_mode = #tpu.pipeline_mode<synchronous>, transform_indices = @transform_5, window_bounds = array<i64: 1, 768>}, {transform_indices = @transform_6, window_bounds = array<i64: 128, 128>}]} {
    %c0 = arith.constant 0 : index
    %c0_0 = arith.constant 0 : index
    %0 = vector.load %arg1[%c0, %c0_0] : memref<128x32xbf16, #tpu.memory_space<vmem>>, vector<128x32xbf16>
    %c0_1 = arith.constant 0 : index
    %c0_2 = arith.constant 0 : index
    %1 = vector.load %arg2[%c0_1, %c0_2] : memref<32x128xbf16, #tpu.memory_space<vmem>>, vector<32x128xbf16>
    %cst = arith.constant dense<0.000000e+00> : vector<128x128xf32>
    %2 = tpu.matmul %0, %1, %cst {dimension_numbers = #tpu.dot_dimension_numbers<[1], [0], [0], [1], [0, 0, 1, 1], [], []>} : vector<128x32xbf16>, vector<32x128xbf16>, vector<128x128xf32> -> vector<128x128xf32>
    %c0_3 = arith.constant 0 : index
    %c0_4 = arith.constant 0 : index
    %3 = vector.load %arg6[%c0_3, %c0_4] : memref<1x768xf32, #tpu.memory_space<vmem>>, vector<1x128xf32>
    %4 = vector.broadcast %3 : vector<1x128xf32> to vector<128x128xf32>
    %5 = arith.addf %2, %4 : vector<128x128xf32>
    %cst_5 = arith.constant 1.000000e-01 : f32
    %6 = vector.broadcast %cst_5 : f32 to vector<128x128xf32>
    %7 = arith.mulf %6, %5 : vector<128x128xf32>
    %8 = arith.maximumf %5, %7 : vector<128x128xf32>
    %9 = arith.truncf %8 : vector<128x128xf32> to vector<128x128xbf16>
    %c0_6 = arith.constant 0 : index
    %c0_7 = arith.constant 0 : index
    %10 = vector.load %arg3[%c0_6, %c0_7] : memref<128x256xbf16, #tpu.memory_space<vmem>>, vector<128x256xbf16>
    %cst_8 = arith.constant dense<0.000000e+00> : vector<128x256xf32>
    %11 = tpu.matmul %9, %10, %cst_8 {dimension_numbers = #tpu.dot_dimension_numbers<[1], [0], [0], [1], [0, 0, 1, 1], [], []>} : vector<128x128xbf16>, vector<128x256xbf16>, vector<128x256xf32> -> vector<128x256xf32>
    %c0_9 = arith.constant 0 : index
    %c128 = arith.constant 128 : index
    %12 = vector.load %arg6[%c0_9, %c128] : memref<1x768xf32, #tpu.memory_space<vmem>>, vector<1x256xf32>
    %13 = vector.broadcast %12 : vector<1x256xf32> to vector<128x256xf32>
    %14 = arith.addf %11, %13 : vector<128x256xf32>
    %cst_10 = arith.constant 1.000000e-01 : f32
    %15 = vector.broadcast %cst_10 : f32 to vector<128x256xf32>
    %16 = arith.mulf %15, %14 : vector<128x256xf32>
    %17 = arith.maximumf %14, %16 : vector<128x256xf32>
    %18 = arith.truncf %17 : vector<128x256xf32> to vector<128x256xbf16>
    %c0_11 = arith.constant 0 : index
    %c0_12 = arith.constant 0 : index
    %19 = vector.load %arg4[%c0_11, %c0_12] : memref<256x128xbf16, #tpu.memory_space<vmem>>, vector<256x128xbf16>
    %cst_13 = arith.constant dense<0.000000e+00> : vector<128x128xf32>
    %20 = tpu.matmul %18, %19, %cst_13 {dimension_numbers = #tpu.dot_dimension_numbers<[1], [0], [0], [1], [0, 0, 1, 1], [], []>} : vector<128x256xbf16>, vector<256x128xbf16>, vector<128x128xf32> -> vector<128x128xf32>
    %c0_14 = arith.constant 0 : index
    %c384 = arith.constant 384 : index
    %21 = vector.load %arg6[%c0_14, %c384] : memref<1x768xf32, #tpu.memory_space<vmem>>, vector<1x128xf32>
    %22 = vector.broadcast %21 : vector<1x128xf32> to vector<128x128xf32>
    %23 = arith.addf %20, %22 : vector<128x128xf32>
    %cst_15 = arith.constant 1.000000e-01 : f32
    %24 = vector.broadcast %cst_15 : f32 to vector<128x128xf32>
    %25 = arith.mulf %24, %23 : vector<128x128xf32>
    %26 = arith.maximumf %23, %25 : vector<128x128xf32>
    %27 = arith.truncf %26 : vector<128x128xf32> to vector<128x128xbf16>
    %c0_16 = arith.constant 0 : index
    %c0_17 = arith.constant 0 : index
    %c0_18 = arith.constant 0 : index
    %28 = vector.load %arg5[%c0_16, %c0_17, %c0_18] : memref<2x128x128xbf16, #tpu.memory_space<vmem>>, vector<1x128x128xbf16>
    %29 = vector.shape_cast %28 : vector<1x128x128xbf16> to vector<128x128xbf16>
    %cst_19 = arith.constant dense<0.000000e+00> : vector<128x128xf32>
    %30 = tpu.matmul %27, %29, %cst_19 {dimension_numbers = #tpu.dot_dimension_numbers<[1], [0], [0], [1], [0, 0, 1, 1], [], []>} : vector<128x128xbf16>, vector<128x128xbf16>, vector<128x128xf32> -> vector<128x128xf32>
    %c0_20 = arith.constant 0 : index
    %c512 = arith.constant 512 : index
    %31 = vector.load %arg6[%c0_20, %c512] : memref<1x768xf32, #tpu.memory_space<vmem>>, vector<1x128xf32>
    %32 = vector.broadcast %31 : vector<1x128xf32> to vector<128x128xf32>
    %33 = arith.addf %30, %32 : vector<128x128xf32>
    %cst_21 = arith.constant 1.000000e-01 : f32
    %34 = vector.broadcast %cst_21 : f32 to vector<128x128xf32>
    %35 = arith.mulf %34, %33 : vector<128x128xf32>
    %36 = arith.maximumf %33, %35 : vector<128x128xf32>
    %37 = arith.truncf %36 : vector<128x128xf32> to vector<128x128xbf16>
    %c1 = arith.constant 1 : index
    %c0_22 = arith.constant 0 : index
    %c0_23 = arith.constant 0 : index
    %38 = vector.load %arg5[%c1, %c0_22, %c0_23] : memref<2x128x128xbf16, #tpu.memory_space<vmem>>, vector<1x128x128xbf16>
    %39 = vector.shape_cast %38 : vector<1x128x128xbf16> to vector<128x128xbf16>
    %cst_24 = arith.constant dense<0.000000e+00> : vector<128x128xf32>
    %40 = tpu.matmul %37, %39, %cst_24 {dimension_numbers = #tpu.dot_dimension_numbers<[1], [0], [0], [1], [0, 0, 1, 1], [], []>} : vector<128x128xbf16>, vector<128x128xbf16>, vector<128x128xf32> -> vector<128x128xf32>
    %c0_25 = arith.constant 0 : index
    %c640 = arith.constant 640 : index
    %41 = vector.load %arg6[%c0_25, %c640] : memref<1x768xf32, #tpu.memory_space<vmem>>, vector<1x128xf32>
    %42 = vector.broadcast %41 : vector<1x128xf32> to vector<128x128xf32>
    %43 = arith.addf %40, %42 : vector<128x128xf32>
    %cst_26 = arith.constant 0.000000e+00 : f32
    %44 = vector.broadcast %cst_26 : f32 to vector<128x128xf32>
    %45 = arith.subf %44, %43 : vector<128x128xf32>
    %46 = math.exp %45 : vector<128x128xf32>
    %cst_27 = arith.constant 1.000000e+00 : f32
    %47 = vector.broadcast %cst_27 : f32 to vector<128x128xf32>
    %48 = arith.addf %47, %46 : vector<128x128xf32>
    %49 = tpu.reciprocal %48 {approx = true} : vector<128x128xf32> -> vector<128x128xf32>
    %c0_28 = arith.constant 0 : index
    %c0_29 = arith.constant 0 : index
    %50 = vector.load %arg7[%c0_28, %c0_29] : memref<128x128xf32, #tpu.memory_space<vmem>>, vector<128x128xf32>
    tpu.vector_store %arg7[%c0_28, %c0_29], %49 {strides = array<i32>} : memref<128x128xf32, #tpu.memory_space<vmem>>, vector<128x128xf32>,
    return
  }
  func.func @transform_0(%arg0: i32) -> (i32, i32) {
    %c0_i32 = arith.constant 0 : i32
    %c0_i32_0 = arith.constant 0 : i32
    return %arg0, %c0_i32 : i32, i32
  }
  func.func @transform_1(%arg0: i32) -> (i32, i32) {
    %c0_i32 = arith.constant 0 : i32
    %c0_i32_0 = arith.constant 0 : i32
    %c0_i32_1 = arith.constant 0 : i32
    return %c0_i32, %c0_i32_0 : i32, i32
  }
  func.func @transform_2(%arg0: i32) -> (i32, i32) {
    %c0_i32 = arith.constant 0 : i32
    %c0_i32_0 = arith.constant 0 : i32
    %c0_i32_1 = arith.constant 0 : i32
    return %c0_i32, %c0_i32_0 : i32, i32
  }
  func.func @transform_3(%arg0: i32) -> (i32, i32) {
    %c0_i32 = arith.constant 0 : i32
    %c0_i32_0 = arith.constant 0 : i32
    %c0_i32_1 = arith.constant 0 : i32
    return %c0_i32, %c0_i32_0 : i32, i32
  }
  func.func @transform_4(%arg0: i32) -> (i32, i32, i32) {
    %c0_i32 = arith.constant 0 : i32
    %c0_i32_0 = arith.constant 0 : i32
    %c0_i32_1 = arith.constant 0 : i32
    %c0_i32_2 = arith.constant 0 : i32
    return %c0_i32, %c0_i32_0, %c0_i32_1 : i32, i32, i32
  }
  func.func @transform_5(%arg0: i32) -> (i32, i32) {
    %c0_i32 = arith.constant 0 : i32
    %c0_i32_0 = arith.constant 0 : i32
    %c0_i32_1 = arith.constant 0 : i32
    return %c0_i32, %c0_i32_0 : i32, i32
  }
  func.func @transform_6(%arg0: i32) -> (i32, i32) {
    %c0_i32 = arith.constant 0 : i32
    %c0_i32_0 = arith.constant 0 : i32
    return %arg0, %c0_i32 : i32, i32
  }
}

</mosaic_0001>

<bundles_post_ra>
// kernel: actor_forward.1
= control target key start
LH: loop header
LB: loop body
LE: loop exit
PB: predicated region body
PF: predicated region fallthrough
CT: control target
= control target key end

     0   :  { %11 = vsyncpa [#allocation3], 0  ;;  %s2635_s0 = inlined_call_operand.vmem [shape: bf16[256,32], index: 0, kind: input, shape index: {}]   ;;  %s2636_s1 = inlined_call_operand.hbm [shape: bf16[32,128], index: 1, kind: input, shape index: {}]   ;;  %s2637_s2 = inlined_call_operand.vmem [shape: bf16[128,256], index: 2, kind: input, shape index: {}]   ;;  %s2638_s3 = inlined_call_operand.vmem [shape: bf16[256,128], index: 3, kind: input, shape index: {}]   ;;  %s2639_s4 = inlined_call_operand.hbm [shape: bf16[2,128,128], index: 4, kind: input, shape index: {}]   ;;  %s2640_s5 = inlined_call_operand.hbm [shape: f32[1,768], index: 5, kind: input, shape index: {}]   ;;  %s2641_s6 = inlined_call_operand.vmem [shape: f32[256,128], index: 6, kind: output, shape index: {}]  }
   0x1   :  { %12 = vsyncpa [#allocation5], 0  ;;  %s2262_s21 = smov 0  }
   0x2 LB: > { %s1672_s22 = sadd.s32 4294967295, %s2219_s21   ;;  %p1674_p0 = scmp.ge.s32.totalorder %s2219_s21, 1  ;;  %s2219_s21 = sphi %s2262_s21, %s18_s21  }
   0x3   : > { %p180_p1 = scmp.lt.s32.totalorder %s2219_s21, 3  ;;  %p2272_p2 = scmp.eq.s32.totalorder %s1672_s22, 0 }
   0x4   : > { %s2221_s25 = smov [#allocation4]   ;;  %s2222_s27 = smov [#allocation2]  }
   0x5   : > { %s2645_s23 = scalar_select %p2272_p2, 1, 0 }
   0x6   : > { %p2276_p3 = pnand %p1674_p0, %p180_p1  ;;  %s211_s26 = sshll.u32 %s2221_s25, 4  ;;  %s212_s26 = int_to_ptr.vmem [resolvable:$true] %s211_s26 }
   0x7   : > { %s192_s28 = sshll.u32 %s2222_s27, 4  ;;  %s2223_s30 = smov [#allocation6]   ;;  %s2288_s28 = int_to_ptr.vmem [resolvable:$true] %s192_s28 }
   0x8   : > { %s2646_s24 = scalar_select %p2276_p3, 1, 0 }
   0x9   : > { %p1961_p4 = pneg %p2276_p3  ;;  %s225_s7 = sshll.u32 %s2223_s30, 4  ;;  %s2290_s7 = int_to_ptr.vmem [resolvable:$true] %s225_s7 }
   0xa   : > { %s2121_s10 = scalar_lea.hbm %s2639_s4, 2048 }
   0xb   : > { %p2284_p5 = pnand %p2272_p2, %p1961_p4  ;;  %p2122_p6 = scmp.ne.s32.totalorder %s2639_s4, %s2121_s10 }
   0xc   : > { %p2128_p10 = scmp.lt.u32.totalorder %s2121_s10, %s2639_s4 }
   0xd   : > { %p2300_p7 = pneg %p2284_p5 }
   0xf   : > { %p2124_p8 = pnand %p2300_p7, %p2122_p6 }
  0x11   : > { %p2125_p9 = pneg %p2124_p8 }
  0x13   : > { %p2130_p11 = pnand %p2128_p10, %p2125_p9 }
  0x15   : > { %2133 = shalt.err (!%p2130_p11)
}
  0x16   : > { %s2134_s16 = scalar_lea.vmem %s212_s26, 2048  ;;  %p2142_p1 = scmp.lt.s32.totalorder %s212_s26, %s212_s26 }
  0x17   : > { %p2135_p12 = scmp.ne.s32.totalorder %s212_s26, %s2134_s16  ;;  %p2143_p4 = scmp.lt.s32.totalorder %s2134_s16, %s2134_s16 }
  0x19   : > { %p2137_p13 = pnand %p2135_p12, %p2300_p7  ;;  %p2144_p2 = por %p2143_p4, %p2142_p1 }
  0x1b   : > { %p2138_p0 = pneg %p2137_p13 }
  0x1d   : > { %p2145_p3 = pnand %p2144_p2, %p2138_p0 }
  0x1f   : > { %2148 = shalt.err (!%p2145_p3)
}
  0x20   : > { %s2224_s17 = smov 64   ;;  %s2225_s18 = smov 4  }
  0x21   : > { %1967 = dma.hbm_to_vmem [thread:$0]  (!%p2284_p5), %s2639_s4, 2048, %s212_s26, [#allocation5], %s2224_s17, %s2224_s17, %s2225_s18  }
  0x22   : > { %s2149_s30 = scalar_lea.hbm %s2636_s1, 256 }
  0x23   : > { %p2150_p6 = scmp.ne.s32.totalorder %s2636_s1, %s2149_s30  ;;  %p2156_p8 = scmp.lt.u32.totalorder %s2149_s30, %s2636_s1 }
  0x25   : > { %p2152_p2 = pnand %p2150_p6, %p2300_p7 }
  0x27   : > { %p2153_p3 = pneg %p2152_p2 }
  0x29   : > { %p2158_p9 = pnand %p2156_p8, %p2153_p3 }
  0x2b   : > { %2161 = shalt.err (!%p2158_p9)
}
  0x2c   : > { %s2162_s26 = scalar_lea.vmem %s2288_s28, 256  ;;  %p2170_p13 = scmp.lt.s32.totalorder %s2288_s28, %s2288_s28 }
  0x2d   : > { %p2163_p10 = scmp.ne.s32.totalorder %s2288_s28, %s2162_s26  ;;  %p2171_p0 = scmp.lt.s32.totalorder %s2162_s26, %s2162_s26 }
  0x2f   : > { %p2165_p11 = pnand %p2163_p10, %p2300_p7  ;;  %p2172_p1 = por %p2171_p0, %p2170_p13 }
  0x31   : > { %p2166_p12 = pneg %p2165_p11 }
  0x33   : > { %p2173_p4 = pnand %p2172_p1, %p2166_p12 }
  0x35   : > { %2176 = shalt.err (!%p2173_p4)
}
  0x36   : > { %1964 = dma.hbm_to_vmem [thread:$0]  (!%p2284_p5), %s2636_s1, 256, %s2288_s28, [#allocation3], %s2224_s17, %s2224_s17, %s2225_s18  }
  0x37   : > { %s2177_s19 = scalar_lea.hbm %s2640_s5, 96 }
  0x38   : > { %p2178_p6 = scmp.ne.s32.totalorder %s2640_s5, %s2177_s19  ;;  %p2184_p8 = scmp.lt.u32.totalorder %s2177_s19, %s2640_s5 }
  0x3a   : > { %p2180_p2 = pnand %p2178_p6, %p2300_p7 }
  0x3c   : > { %p2181_p3 = pneg %p2180_p2 }
  0x3e   : > { %p2186_p9 = pnand %p2184_p8, %p2181_p3 }
  0x40   : > { %2189 = shalt.err (!%p2186_p9)
}
  0x41   : > { %s2190_s28 = scalar_lea.vmem %s2290_s7, 96  ;;  %p2198_p13 = scmp.lt.s32.totalorder %s2290_s7, %s2290_s7 }
  0x42   : > { %p2191_p10 = scmp.ne.s32.totalorder %s2290_s7, %s2190_s28  ;;  %p2199_p0 = scmp.lt.s32.totalorder %s2190_s28, %s2190_s28 }
  0x44   : > { %p2193_p11 = pnand %p2191_p10, %p2300_p7  ;;  %p2200_p1 = por %p2199_p0, %p2198_p13 }
  0x46   : > { %p2194_p12 = pneg %p2193_p11 }
  0x48   : > { %p2201_p4 = pnand %p2200_p1, %p2194_p12 }
  0x4a   : > { %2204 = shalt.err (!%p2201_p4)
}
  0x4b   : > { %1970 = dma.hbm_to_vmem [thread:$0]  (!%p2284_p5), %s2640_s5, 96, %s2290_s7, [#allocation5]  }
  0x4c   : > { %p2649_p6 = scmp.ne.s32.totalorder %s2646_s24, 0 }
  0x4d   : > { %p2650_p2 = scmp.ne.s32.totalorder (!%p2649_p6), %s2645_s23, 0 }
  0x4e   : > { %247 = sbr.rel (%p2649_p6) target bundleno = 1298 (0x512), region = 44 }
  0x55   : > { %2210 = dma.done.wait (%p2650_p2), [#allocation3], 256  }
  0x56   : > { %2212 = vsyncadd (%p2650_p2), [#allocation3], 4294967040 }
  0x57   : > { %2214 = dma.done.wait (%p2650_p2), [#allocation5], 2144  }
  0x58   : > { %2216 = vsyncadd (%p2650_p2), [#allocation5], 4294965152  ;;  %s1683_s29 = sshll.u32 %s1672_s22, 4  ;;  %v1991_v0 = vld [vmem:[#allocation2] sm:$0xff]   ;;  %v1992_v1 = vld [vmem:[#allocation2 + $0x8] sm:$0xff]   ;;  %vm377_vm0 = vcmask 261120  }
  0x59   : > { %p286_p7 = scmp.lt.s32.totalorder %s1683_s29, 31  ;;  %1865 = vmatprep.subr.bf16.mxu0 %v1991_v0  ;;  %v2001_v5 = vld [vmem:[%s2637_s2 + $0x4] ss:$8 sps:$4 sm:$0xff]   ;;  %v2003_v6 = vld [vmem:[%s2637_s2] ss:$8 sps:$4 sm:$0xff]   ;;  %v2226_v26 = vmov 0  }
  0x5a   : > { %1866 = vmatpush3.bf16.msra.mxu0 %v1991_v0  ;;  %647 = vmatprep.subr.bf16.mxu1 %v2001_v5  ;;  %v2004_v7 = vld [vmem:[%s2637_s2 + $0x14] ss:$8 sps:$4 sm:$0xff]   ;;  %v2006_v9 = vld [vmem:[%s2637_s2 + $0x10] ss:$8 sps:$4 sm:$0xff]   ;;  %v2007_v10 = vld [vmem:[%s2637_s2 + $0x24] ss:$8 sps:$4 sm:$0xff]  }
  0x5b   : > { %s2652_s29 = smov (!%p286_p7, %s1683_s29), 31  ;;  %1867 = vmatprep.subr.bf16.mxu0 %v1992_v1  ;;  %648 = vmatpush1.bf16.msra.mxu1 %v2003_v6  ;;  %v2009_v12 = vld [vmem:[%s2637_s2 + $0x20] ss:$8 sps:$4 sm:$0xff]   ;;  %v2010_v13 = vld [vmem:[%s2637_s2 + $0x34] ss:$8 sps:$4 sm:$0xff]  }
  0x5c   : > { %s1684_s24 = sshll.u32 %s2652_s29, 2  ;;  %649 = vmatprep.subr.bf16.mxu1 %v2004_v7  ;;  %v2012_v14 = vld [vmem:[%s2637_s2 + $0x30] ss:$8 sps:$4 sm:$0xff]   ;;  %v2013_v16 = vld [vmem:[%s2637_s2 + $0x44] ss:$8 sps:$4 sm:$0xff]   ;;  %679 = vmatprep.mubr.bf16.mxu1 %v2226_v26  ;;  %s1686_s13 = sshll.u32 %s2652_s29, 3 }
  0x5d   : > { %s2380_s8 = scalar_lea.vmem %s2635_s0, %s1684_s24  ;;  %v2015_v18 = vld [vmem:[%s2637_s2 + $0x40] ss:$8 sps:$4 sm:$0xff]   ;;  %v2016_v20 = vld [vmem:[%s2637_s2 + $0x54] ss:$8 sps:$4 sm:$0xff]   ;;  %v2018_v21 = vld [vmem:[%s2637_s2 + $0x50] ss:$8 sps:$4 sm:$0xff]   ;;  %s2606_s9 = scalar_lea.vmem %s2641_s6, %s1686_s13 }
  0x5e   : > { %v1993_v2 = vld [vmem:[%s2380_s8] sm:$0xff]   ;;  %v1994_v3 = vld [vmem:[%s2380_s8 + $0x8] sm:$0xff]   ;;  %1868 = vmatpush3.bf16.msra.mxu0 %v1992_v1  ;;  %v1995_v4 = vld [vmem:[%s2380_s8 + $0x10] sm:$0xff]  }
  0x5f   : > { %1869 = vmatprep.mubr.msk.bf16.mxu0 %vm377_vm0, %v1993_v2  ;;  %v1996_v8 = vld [vmem:[%s2380_s8 + $0x18] sm:$0xff]   ;;  %v1997_v11 = vld [vmem:[%s2380_s8 + $0x20] sm:$0xff]   ;;  %650 = vmatpush1.bf16.msra.mxu1 %v2006_v9  ;;  %v1998_v15 = vld [vmem:[%s2380_s8 + $0x28] sm:$0xff]  }
  0x60   : > { %651 = vmatprep.subr.bf16.mxu1 %v2007_v10  ;;  %v1999_v17 = vld [vmem:[%s2380_s8 + $0x30] sm:$0xff]   ;;  %v2000_v19 = vld [vmem:[%s2380_s8 + $0x38] sm:$0xff]   ;;  %v2019_v22 = vld [vmem:[%s2637_s2 + $0x64] ss:$8 sps:$4 sm:$0xff]  }
  0x61   : > { %1870 = vmatmul.mubr.msk.bf16.vlgmr.msra.gmra.mrb[0].mxu0 %vm377_vm0, %v1994_v3  ;;  %v2021_v23 = vld [vmem:[%s2637_s2 + $0x60] ss:$8 sps:$4 sm:$0xff]   ;;  %v2022_v24 = vld [vmem:[%s2637_s2 + $0x74] ss:$8 sps:$4 sm:$0xff]   ;;  %v2024_v25 = vld [vmem:[%s2637_s2 + $0x70] ss:$8 sps:$4 sm:$0xff]  }
  0x62   : > { %1873 = vmatprep.mubr.msk.bf16.mxu0 %vm377_vm0, %v1995_v4  ;;  %v2025_v27 = vld [vmem:[%s2638_s3 + $0x40] sm:$0xff]   ;;  %v2027_v29 = vld [vmem:[%s2638_s3 + $0x48] sm:$0xff]   ;;  %v2029_v31 = vld [vmem:[%s2638_s3 + $0x50] sm:$0xff]  }
  0x63   : > { %652 = vmatpush1.bf16.msra.mxu1 %v2009_v12  ;;  %v2026_v28 = vld [vmem:[%s2638_s3] sm:$0xff]   ;;  %1769 = vmatprep.subr.bf16.mxu0 %v2025_v27  ;;  %v2028_v30 = vld [vmem:[%s2638_s3 + $0x8] sm:$0xff]   ;;  %v2030_v32 = vld [vmem:[%s2638_s3 + $0x10] sm:$0xff]  }
  0x64   : > { %653 = vmatprep.subr.bf16.mxu1 %v2010_v13  ;;  %1770 = vmatpush3.bf16.msra.mxu0 %v2026_v28  ;;  %v2031_v33 = vld [vmem:[%s2638_s3 + $0x58] sm:$0xff]   ;;  %v2033_v35 = vld [vmem:[%s2638_s3 + $0x60] sm:$0xff]   ;;  %v2477_v37 = vld [vmem:[#allocation6] ss:$0 sm:$0xff] }
  0x65   : > { %1771 = vmatprep.subr.bf16.mxu0 %v2027_v29  ;;  %v2032_v34 = vld [vmem:[%s2638_s3 + $0x18] sm:$0xff]   ;;  %v2034_v36 = vld [vmem:[%s2638_s3 + $0x20] sm:$0xff]  }
  0x67   : > { %654 = vmatpush1.bf16.msra.mxu1 %v2012_v14 }
  0x68   : > { %655 = vmatprep.subr.bf16.mxu1 %v2013_v16  ;;  %1772 = vmatpush3.bf16.msra.mxu0 %v2028_v30 }
  0x69   : > { %1874 = vmatmul.mubr.msk.bf16.gmra.mrb[4].mxu0 %vm377_vm0, %v1996_v8  ;;  %1773 = vmatprep.subr.bf16.mxu0 %v2029_v31 }
  0x6a   : > { %1877 = vmatprep.mubr.msk.bf16.mxu0 %vm377_vm0, %v1997_v11 }
  0x6b   : > { %656 = vmatpush1.bf16.msra.mxu1 %v2015_v18 }
  0x6c   : > { %657 = vmatprep.subr.bf16.mxu1 %v2016_v20  ;;  %1774 = vmatpush3.bf16.msra.mxu0 %v2030_v32 }
  0x6d   : > { %1775 = vmatprep.subr.bf16.mxu0 %v2031_v33 }
  0x6f   : > { %658 = vmatpush1.bf16.msra.mxu1 %v2018_v21 }
  0x70   : > { %659 = vmatprep.subr.bf16.mxu1 %v2019_v22  ;;  %1776 = vmatpush3.bf16.msra.mxu0 %v2032_v34 }
  0x71   : > { %1878 = vmatmul.mubr.msk.bf16.gmra.mrb[8].mxu0 %vm377_vm0, %v1998_v15  ;;  %1777 = vmatprep.subr.bf16.mxu0 %v2033_v35 }
  0x72   : > { %1881 = vmatprep.mubr.msk.bf16.mxu0 %vm377_vm0, %v1999_v17 }
  0x73   : > { %660 = vmatpush1.bf16.msra.mxu1 %v2021_v23 }
  0x74   : > { %661 = vmatprep.subr.bf16.mxu1 %v2022_v24  ;;  %1778 = vmatpush3.bf16.msra.mxu0 %v2034_v36 }
  0x77   : > { %662 = vmatpush1.bf16.msra.mxu1 %v2024_v25 }
  0x79   : > { %1882 = vmatmul.mubr.msk.bf16.gmra.mrb[12].mxu0 %vm377_vm0, %v2000_v19 }
 0x134   : > { %v1871_v38 = vpop.f32.mrb[0].mxu0 }
 0x135   : > { %v445_v39 = vadd.f32 %v1871_v38, %v2477_v37  ;;  %v436_v40 = vpop.f32.mrb[1].mxu0 }
 0x136   : > { %v437_v41 = vadd.f32 %v2477_v37, %v436_v40  ;;  %v1872_v42 = vpop.f32.mrb[2].mxu0 }
 0x137   : > { %v501_v43 = vmul.f32 0.1, %v445_v39  ;;  %v448_v44 = vadd.f32 %v1872_v42, %v2477_v37  ;;  %v439_v45 = vpop.f32.mrb[3].mxu0 }
 0x138   : > { %v499_v46 = vmul.f32 0.1, %v437_v41  ;;  %v440_v47 = vadd.f32 %v2477_v37, %v439_v45 }
 0x139   : > { %v502_v48 = vmul.f32 0.1, %v448_v44  ;;  %v517_v50 = vmax.f32 %v445_v39, %v501_v43 }
 0x13a   : > { %v500_v49 = vmul.f32 0.1, %v440_v47  ;;  %v515_v52 = vmax.f32 %v437_v41, %v499_v46 }
 0x13b   : > { %v518_v51 = vmax.f32 %v448_v44, %v502_v48  ;;  %v2036_v48 = vld [vmem:[%s2638_s3 + $0x28] sm:$0xff]  }
 0x13c   : > { %v516_v53 = vmax.f32 %v440_v47, %v500_v49  ;;  %v1875_v54 = vpop.f32.mrb[4].mxu0  ;;  %v2037_v49 = vld [vmem:[%s2638_s3 + $0x70] sm:$0xff]  }
 0x13d   : > { %v461_v55 = vadd.f32 %v1875_v54, %v2477_v37  ;;  %v452_v56 = vpop.f32.mrb[5].mxu0  ;;  %v532_v57 = vpack.c.bf16 %v518_v51, %v517_v50  ;;  %v2038_v50 = vld [vmem:[%s2638_s3 + $0x30] sm:$0xff]   ;;  %v2040_v51 = vld [vmem:[%s2638_s3 + $0x38] sm:$0xff]   ;;  %v2043_v54 = vld [vmem:[#allocation4 + $0x10] sm:$0xff]  }
 0x13e   : > { %v453_v58 = vadd.f32 %v2477_v37, %v452_v56  ;;  %v531_v59 = vpack.c.bf16 %v516_v53, %v515_v52  ;;  %v1876_v60 = vpop.f32.mrb[6].mxu0  ;;  %v2041_v52 = vld [vmem:[#allocation4] sm:$0xff]   ;;  %v2042_v53 = vld [vmem:[#allocation4 + $0x8] sm:$0xff]  }
 0x13f   : > { %v505_v61 = vmul.f32 0.1, %v461_v55  ;;  %v464_v62 = vadd.f32 %v1876_v60, %v2477_v37  ;;  %v455_v63 = vpop.f32.mrb[7].mxu0  ;;  %1885 = vmatprep.subr.bf16.mxu1 %v2041_v52 }
 0x140   : > { %v503_v0 = vmul.f32 0.1, %v453_v58  ;;  %680 = vmatmul.mubr.bf16.vlgmr.msra.gmra.mrb[0].mxu1 %v531_v59  ;;  %v456_v1 = vadd.f32 %v2477_v37, %v455_v63 }
 0x141   : > { %v521_v2 = vmax.f32 %v461_v55, %v505_v61  ;;  %v506_v3 = vmul.f32 0.1, %v464_v62  ;;  %689 = vmatprep.mubr.bf16.mxu1 %v2226_v26  ;;  %1886 = vmatpush3.bf16.msra.mxu1 %v2041_v52  ;;  %v557_v55 = vlaneseq }
 0x142   : > { %v519_v4 = vmax.f32 %v453_v58, %v503_v0  ;;  %v504_v5 = vmul.f32 0.1, %v456_v1  ;;  %1887 = vmatprep.subr.bf16.mxu1 %v2042_v53  ;;  %v555_v58 = vld [vmem:[#allocation6 + $0x1] sm:$0x3] }
 0x143   : > { %v522_v6 = vmax.f32 %v464_v62, %v506_v3  ;;  %v558_v56 = vshrl.u32 %v557_v55, 7 }
 0x144   : > { %v520_v7 = vmax.f32 %v456_v1, %v504_v5  ;;  %v1879_v8 = vpop.f32.mrb[8].mxu0 }
 0x145   : > { %v477_v9 = vadd.f32 %v1879_v8, %v2477_v37  ;;  %v468_v10 = vpop.f32.mrb[9].mxu0  ;;  %v534_v11 = vpack.c.bf16 %v522_v6, %v521_v2  ;;  %1888 = vmatpush3.bf16.msra.mxu1 %v2042_v53  ;;  %v563_v59 = vsub.s32 1, %v558_v56 }
 0x146   : > { %v469_v12 = vadd.f32 %v2477_v37, %v468_v10  ;;  %v533_v13 = vpack.c.bf16 %v520_v7, %v519_v4  ;;  %v1880_v14 = vpop.f32.mrb[10].mxu0  ;;  %1889 = vmatprep.subr.bf16.mxu1 %v2043_v54 }
 0x147   : > { %v509_v15 = vmul.f32 0.1, %v477_v9  ;;  %v480_v16 = vadd.f32 %v1880_v14, %v2477_v37  ;;  %v471_v17 = vpop.f32.mrb[11].mxu0  ;;  %v2522_v61 = vrot.slane %v555_v58, %v563_v59 }
 0x148   : > { %690 = vmatmul.mubr.bf16.gmra.mrb[4].mxu1 %v532_v57  ;;  %v507_v18 = vmul.f32 0.1, %v469_v12  ;;  %v472_v19 = vadd.f32 %v2477_v37, %v471_v17  ;;  %v559_v57 = vsub.s32 0, %v558_v56 }
 0x149   : > { %v525_v20 = vmax.f32 %v477_v9, %v509_v15  ;;  %699 = vmatprep.mubr.bf16.mxu1 %v2226_v26  ;;  %v510_v21 = vmul.f32 0.1, %v480_v16  ;;  %1890 = vmatpush3.bf16.msra.mxu1 %v2043_v54 }
 0x14a   : > { %v523_v22 = vmax.f32 %v469_v12, %v507_v18  ;;  %v508_v23 = vmul.f32 0.1, %v472_v19  ;;  %v2520_v60 = vrot.slane %v555_v58, %v559_v57 }
 0x14b   : > { %v526_v24 = vmax.f32 %v480_v16, %v510_v21 }
 0x14c   : > { %v524_v25 = vmax.f32 %v472_v19, %v508_v23  ;;  %v1883_v27 = vpop.f32.mrb[12].mxu0 }
 0x14d   : > { %v493_v28 = vadd.f32 %v1883_v27, %v2477_v37  ;;  %v484_v29 = vpop.f32.mrb[13].mxu0  ;;  %v536_v30 = vpack.c.bf16 %v526_v24, %v525_v20 }
 0x14e   : > { %v485_v31 = vadd.f32 %v2477_v37, %v484_v29  ;;  %v535_v32 = vpack.c.bf16 %v524_v25, %v523_v22  ;;  %v1884_v33 = vpop.f32.mrb[14].mxu0 }
 0x14f   : > { %v513_v34 = vmul.f32 0.1, %v493_v28  ;;  %v496_v35 = vadd.f32 %v1884_v33, %v2477_v37  ;;  %v487_v36 = vpop.f32.mrb[15].mxu0 }
 0x150   : > { %700 = vmatmul.mubr.bf16.gmra.mrb[8].mxu1 %v533_v13  ;;  %v511_v38 = vmul.f32 0.1, %v485_v31  ;;  %v488_v39 = vadd.f32 %v2477_v37, %v487_v36  ;;  %v2035_v37 = vld [vmem:[%s2638_s3 + $0x68] sm:$0xff]  }
 0x151   : > { %709 = vmatprep.mubr.bf16.mxu1 %v2226_v26  ;;  %v529_v40 = vmax.f32 %v493_v28, %v513_v34  ;;  %v514_v41 = vmul.f32 0.1, %v496_v35  ;;  %1779 = vmatprep.subr.bf16.mxu0 %v2035_v37 }
 0x152   : > { %v527_v42 = vmax.f32 %v485_v31, %v511_v38  ;;  %v512_v43 = vmul.f32 0.1, %v488_v39  ;;  %1780 = vmatpush3.bf16.msra.mxu0 %v2036_v48 }
 0x153   : > { %v530_v44 = vmax.f32 %v496_v35, %v514_v41  ;;  %1781 = vmatprep.subr.bf16.mxu0 %v2037_v49 }
 0x154   : > { %v528_v45 = vmax.f32 %v488_v39, %v512_v43 }
 0x155   : > { %v538_v46 = vpack.c.bf16 %v530_v44, %v529_v40 }
 0x156   : > { %v537_v47 = vpack.c.bf16 %v528_v45, %v527_v42  ;;  %1782 = vmatpush3.bf16.msra.mxu0 %v2038_v50 }
 0x158   : > { %710 = vmatmul.mubr.bf16.gmra.mrb[12].mxu1 %v534_v11 }
 0x159   : > { %719 = vmatprep.mubr.bf16.mxu1 %v2226_v26 }
 0x160   : > { %720 = vmatmul.mubr.bf16.gmra.mrb[16].mxu1 %v535_v32 }
 0x161   : > { %729 = vmatprep.mubr.bf16.mxu1 %v2226_v26 }
 0x168   : > { %730 = vmatmul.mubr.bf16.gmra.mrb[20].mxu1 %v536_v30 }
 0x169   : > { %739 = vmatprep.mubr.bf16.mxu1 %v2226_v26 }
 0x170   : > { %740 = vmatmul.mubr.bf16.gmra.mrb[24].mxu1 %v537_v47 }
 0x171   : > { %749 = vmatprep.mubr.bf16.mxu1 %v2226_v26  ;;  %v2039_v26 = vld [vmem:[%s2638_s3 + $0x78] sm:$0xff]  }
 0x172   : > { %1783 = vmatprep.subr.bf16.mxu0 %v2039_v26 }
 0x173   : > { %1784 = vmatpush3.bf16.msra.mxu0 %v2040_v51 }
 0x178   : > { %750 = vmatmul.mubr.bf16.gmra.mrb[28].mxu1 %v538_v46 }
 0x213   : > { %v681_v62 = vpop.f32.mrb[0].mxu1 }
 0x214   : > { %v682_v63 = vadd.f32 %v681_v62, %v2520_v60  ;;  %v683_v0 = vpop.f32.mrb[1].mxu1 }
 0x215   : > { %v684_v1 = vadd.f32 %v683_v0, %v2522_v61  ;;  %v685_v2 = vpop.f32.mrb[2].mxu1 }
 0x216   : > { %v760_v3 = vmul.f32 0.1, %v682_v63  ;;  %v686_v4 = vadd.f32 %v685_v2, %v2520_v60  ;;  %v687_v5 = vpop.f32.mrb[3].mxu1 }
 0x217   : > { %v761_v6 = vmul.f32 0.1, %v684_v1  ;;  %v688_v7 = vadd.f32 %v687_v5, %v2522_v61 }
 0x218   : > { %v762_v8 = vmul.f32 0.1, %v686_v4  ;;  %v792_v10 = vmax.f32 %v682_v63, %v760_v3 }
 0x219   : > { %v763_v9 = vmul.f32 0.1, %v688_v7  ;;  %v793_v12 = vmax.f32 %v684_v1, %v761_v6 }
 0x21a   : > { %v794_v11 = vmax.f32 %v686_v4, %v762_v8 }
 0x21b   : > { %v795_v13 = vmax.f32 %v688_v7, %v763_v9  ;;  %v691_v14 = vpop.f32.mrb[4].mxu1 }
 0x21c   : > { %v824_v15 = vpack.c.bf16 %v794_v11, %v792_v10  ;;  %v692_v16 = vadd.f32 %v691_v14, %v2520_v60  ;;  %v693_v17 = vpop.f32.mrb[5].mxu1 }
 0x21d   : > { %v694_v18 = vadd.f32 %v693_v17, %v2522_v61  ;;  %v695_v19 = vpop.f32.mrb[6].mxu1  ;;  %v825_v20 = vpack.c.bf16 %v795_v13, %v793_v12 }
 0x21e   : > { %v764_v21 = vmul.f32 0.1, %v692_v16  ;;  %v696_v22 = vadd.f32 %v695_v19, %v2520_v60  ;;  %v697_v23 = vpop.f32.mrb[7].mxu1 }
 0x21f   : > { %v765_v24 = vmul.f32 0.1, %v694_v18  ;;  %v698_v25 = vadd.f32 %v697_v23, %v2522_v61  ;;  %1007 = vmatprep.mubr.bf16.mxu0 %v825_v20 }
 0x220   : > { %v766_v27 = vmul.f32 0.1, %v696_v22  ;;  %1008 = vmatmul.mubr.bf16.vlgmr.msra.gmra.mrb[16].mxu0 %v824_v15  ;;  %v796_v29 = vmax.f32 %v692_v16, %v764_v21 }
 0x221   : > { %v767_v28 = vmul.f32 0.1, %v698_v25  ;;  %v797_v31 = vmax.f32 %v694_v18, %v765_v24 }
 0x222   : > { %v798_v30 = vmax.f32 %v696_v22, %v766_v27 }
 0x223   : > { %v799_v32 = vmax.f32 %v698_v25, %v767_v28  ;;  %v701_v33 = vpop.f32.mrb[8].mxu1 }
 0x224   : > { %v702_v34 = vadd.f32 %v701_v33, %v2520_v60  ;;  %v703_v35 = vpop.f32.mrb[9].mxu1  ;;  %v826_v36 = vpack.c.bf16 %v798_v30, %v796_v29 }
 0x225   : > { %v704_v38 = vadd.f32 %v703_v35, %v2522_v61  ;;  %v705_v39 = vpop.f32.mrb[10].mxu1  ;;  %v827_v40 = vpack.c.bf16 %v799_v32, %v797_v31 }
 0x226   : > { %v768_v41 = vmul.f32 0.1, %v702_v34  ;;  %v706_v42 = vadd.f32 %v705_v39, %v2520_v60  ;;  %v707_v43 = vpop.f32.mrb[11].mxu1 }
 0x227   : > { %v769_v44 = vmul.f32 0.1, %v704_v38  ;;  %v708_v45 = vadd.f32 %v707_v43, %v2522_v61  ;;  %1015 = vmatprep.mubr.bf16.mxu0 %v827_v40 }
 0x228   : > { %v770_v46 = vmul.f32 0.1, %v706_v42  ;;  %1016 = vmatmul.mubr.bf16.gmra.mrb[20].mxu0 %v826_v36  ;;  %v800_v37 = vmax.f32 %v702_v34, %v768_v41 }
 0x229   : > { %v771_v47 = vmul.f32 0.1, %v708_v45  ;;  %v801_v49 = vmax.f32 %v704_v38, %v769_v44 }
 0x22a   : > { %v802_v48 = vmax.f32 %v706_v42, %v770_v46 }
 0x22b   : > { %v803_v50 = vmax.f32 %v708_v45, %v771_v47  ;;  %v711_v26 = vpop.f32.mrb[12].mxu1 }
 0x22c   : > { %v712_v51 = vadd.f32 %v711_v26, %v2520_v60  ;;  %v713_v52 = vpop.f32.mrb[13].mxu1  ;;  %v828_v53 = vpack.c.bf16 %v802_v48, %v800_v37 }
 0x22d   : > { %v714_v54 = vadd.f32 %v713_v52, %v2522_v61  ;;  %v715_v55 = vpop.f32.mrb[14].mxu1  ;;  %v829_v56 = vpack.c.bf16 %v803_v50, %v801_v49 }
 0x22e   : > { %v772_v57 = vmul.f32 0.1, %v712_v51  ;;  %v716_v58 = vadd.f32 %v715_v55, %v2520_v60  ;;  %v717_v59 = vpop.f32.mrb[15].mxu1 }
 0x22f   : > { %v773_v62 = vmul.f32 0.1, %v714_v54  ;;  %v718_v63 = vadd.f32 %v717_v59, %v2522_v61  ;;  %1023 = vmatprep.mubr.bf16.mxu0 %v829_v56 }
 0x230   : > { %v774_v0 = vmul.f32 0.1, %v716_v58  ;;  %1024 = vmatmul.mubr.bf16.gmra.mrb[24].mxu0 %v828_v53  ;;  %v804_v2 = vmax.f32 %v712_v51, %v772_v57 }
 0x231   : > { %v775_v1 = vmul.f32 0.1, %v718_v63  ;;  %v805_v4 = vmax.f32 %v714_v54, %v773_v62 }
 0x232   : > { %v806_v3 = vmax.f32 %v716_v58, %v774_v0 }
 0x233   : > { %v807_v5 = vmax.f32 %v718_v63, %v775_v1  ;;  %v721_v6 = vpop.f32.mrb[16].mxu1 }
 0x234   : > { %v722_v7 = vadd.f32 %v721_v6, %v2520_v60  ;;  %v723_v8 = vpop.f32.mrb[17].mxu1  ;;  %v830_v9 = vpack.c.bf16 %v806_v3, %v804_v2 }
 0x235   : > { %v724_v10 = vadd.f32 %v723_v8, %v2522_v61  ;;  %v725_v11 = vpop.f32.mrb[18].mxu1  ;;  %v831_v12 = vpack.c.bf16 %v807_v5, %v805_v4 }
 0x236   : > { %v776_v13 = vmul.f32 0.1, %v722_v7  ;;  %v726_v14 = vadd.f32 %v725_v11, %v2520_v60  ;;  %v727_v15 = vpop.f32.mrb[19].mxu1 }
 0x237   : > { %v777_v16 = vmul.f32 0.1, %v724_v10  ;;  %v728_v17 = vadd.f32 %v727_v15, %v2522_v61  ;;  %1031 = vmatprep.mubr.bf16.mxu0 %v831_v12 }
 0x238   : > { %v778_v18 = vmul.f32 0.1, %v726_v14  ;;  %1032 = vmatmul.mubr.bf16.gmra.mrb[28].mxu0 %v830_v9  ;;  %v808_v20 = vmax.f32 %v722_v7, %v776_v13 }
 0x239   : > { %v779_v19 = vmul.f32 0.1, %v728_v17  ;;  %v809_v22 = vmax.f32 %v724_v10, %v777_v16 }
 0x23a   : > { %v810_v21 = vmax.f32 %v726_v14, %v778_v18  ;;  %v2044_v18 = vld [vmem:[#allocation4 + $0x18] sm:$0xff]  }
 0x23b   : > { %v811_v23 = vmax.f32 %v728_v17, %v779_v19  ;;  %v731_v24 = vpop.f32.mrb[20].mxu1  ;;  %1891 = vmatprep.subr.bf16.mxu1 %v2044_v18  ;;  %v2046_v19 = vld [vmem:[#allocation4 + $0x28] sm:$0xff]  }
 0x23c   : > { %v732_v25 = vadd.f32 %v731_v24, %v2520_v60  ;;  %v733_v27 = vpop.f32.mrb[21].mxu1  ;;  %v832_v28 = vpack.c.bf16 %v810_v21, %v808_v20  ;;  %1892 = vmatpush3.bf16.msra.mxu1 %v2044_v18  ;;  %v2048_v20 = vld [vmem:[#allocation4 + $0x38] sm:$0xff]   ;;  %v2049_v21 = vld [vmem:[#allocation4 + $0x40] sm:$0xff]  }
 0x23d   : > { %v734_v29 = vadd.f32 %v733_v27, %v2522_v61  ;;  %v735_v30 = vpop.f32.mrb[22].mxu1  ;;  %v833_v31 = vpack.c.bf16 %v811_v23, %v809_v22  ;;  %v2050_v22 = vld [vmem:[#allocation4 + $0x48] sm:$0xff]   ;;  %1917 = vmatprep.subr.bf16.mxu0 %v2049_v21  ;;  %v2051_v23 = vld [vmem:[#allocation4 + $0x50] sm:$0xff]   ;;  %v2052_v24 = vld [vmem:[#allocation4 + $0x58] sm:$0xff]  }
 0x23e   : > { %v780_v32 = vmul.f32 0.1, %v732_v25  ;;  %v736_v33 = vadd.f32 %v735_v30, %v2520_v60  ;;  %v737_v34 = vpop.f32.mrb[23].mxu1  ;;  %1918 = vmatpush3.bf16.msra.mxu0 %v2049_v21 }
 0x23f   : > { %v781_v35 = vmul.f32 0.1, %v734_v29  ;;  %v738_v36 = vadd.f32 %v737_v34, %v2522_v61  ;;  %1039 = vmatprep.mubr.bf16.mxu0 %v833_v31  ;;  %1919 = vmatprep.subr.bf16.mxu0 %v2050_v22 }
 0x240   : > { %v782_v38 = vmul.f32 0.1, %v736_v33  ;;  %1040 = vmatmul.mubr.bf16.gmra.mrb[32].mxu0 %v832_v28  ;;  %v812_v40 = vmax.f32 %v732_v25, %v780_v32  ;;  %v2053_v25 = vld [vmem:[#allocation4 + $0x60] sm:$0xff]  }
 0x241   : > { %v783_v39 = vmul.f32 0.1, %v738_v36  ;;  %v813_v42 = vmax.f32 %v734_v29, %v781_v35  ;;  %v2556_v28 = vld [vmem:[#allocation6 + $0x3] ss:$0 sm:$0xff] }
 0x242   : > { %v814_v41 = vmax.f32 %v736_v33, %v782_v38  ;;  %1920 = vmatpush3.bf16.msra.mxu0 %v2050_v22 }
 0x243   : > { %v815_v43 = vmax.f32 %v738_v36, %v783_v39  ;;  %v741_v44 = vpop.f32.mrb[24].mxu1  ;;  %1921 = vmatprep.subr.bf16.mxu0 %v2051_v23 }
 0x244   : > { %v742_v45 = vadd.f32 %v741_v44, %v2520_v60  ;;  %v743_v46 = vpop.f32.mrb[25].mxu1  ;;  %v834_v47 = vpack.c.bf16 %v814_v41, %v812_v40 }
 0x245   : > { %v744_v37 = vadd.f32 %v743_v46, %v2522_v61  ;;  %v745_v48 = vpop.f32.mrb[26].mxu1  ;;  %v835_v49 = vpack.c.bf16 %v815_v43, %v813_v42 }
 0x246   : > { %v784_v50 = vmul.f32 0.1, %v742_v45  ;;  %v746_v26 = vadd.f32 %v745_v48, %v2520_v60  ;;  %v747_v51 = vpop.f32.mrb[27].mxu1  ;;  %1922 = vmatpush3.bf16.msra.mxu0 %v2051_v23 }
 0x247   : > { %v785_v52 = vmul.f32 0.1, %v744_v37  ;;  %v748_v53 = vadd.f32 %v747_v51, %v2522_v61  ;;  %1047 = vmatprep.mubr.bf16.mxu0 %v835_v49  ;;  %1923 = vmatprep.subr.bf16.mxu0 %v2052_v24 }
 0x248   : > { %v786_v54 = vmul.f32 0.1, %v746_v26  ;;  %1048 = vmatmul.mubr.bf16.gmra.mrb[36].mxu0 %v834_v47  ;;  %v816_v56 = vmax.f32 %v742_v45, %v784_v50 }
 0x249   : > { %v787_v55 = vmul.f32 0.1, %v748_v53  ;;  %v817_v58 = vmax.f32 %v744_v37, %v785_v52 }
 0x24a   : > { %v818_v57 = vmax.f32 %v746_v26, %v786_v54  ;;  %1924 = vmatpush3.bf16.msra.mxu0 %v2052_v24 }
 0x24b   : > { %v819_v59 = vmax.f32 %v748_v53, %v787_v55  ;;  %v751_v62 = vpop.f32.mrb[28].mxu1  ;;  %1925 = vmatprep.subr.bf16.mxu0 %v2053_v25 }
 0x24c   : > { %v752_v63 = vadd.f32 %v751_v62, %v2520_v60  ;;  %v753_v0 = vpop.f32.mrb[29].mxu1  ;;  %v836_v1 = vpack.c.bf16 %v818_v57, %v816_v56 }
 0x24d   : > { %v754_v2 = vadd.f32 %v753_v0, %v2522_v61  ;;  %v755_v3 = vpop.f32.mrb[30].mxu1  ;;  %v837_v4 = vpack.c.bf16 %v819_v59, %v817_v58 }
 0x24e   : > { %v788_v5 = vmul.f32 0.1, %v752_v63  ;;  %v756_v6 = vadd.f32 %v755_v3, %v2520_v60  ;;  %v757_v7 = vpop.f32.mrb[31].mxu1  ;;  %v2045_v60 = vld [vmem:[#allocation4 + $0x20] sm:$0xff]   ;;  %1926 = vmatpush3.bf16.msra.mxu0 %v2053_v25 }
 0x24f   : > { %v789_v8 = vmul.f32 0.1, %v754_v2  ;;  %v758_v9 = vadd.f32 %v757_v7, %v2522_v61  ;;  %1055 = vmatprep.mubr.bf16.mxu0 %v837_v4  ;;  %1893 = vmatprep.subr.bf16.mxu1 %v2045_v60  ;;  %v2047_v61 = vld [vmem:[#allocation4 + $0x30] sm:$0xff]  }
 0x250   : > { %v790_v10 = vmul.f32 0.1, %v756_v6  ;;  %1056 = vmatmul.mubr.bf16.gmra.mrb[40].mxu0 %v836_v1  ;;  %v820_v12 = vmax.f32 %v752_v63, %v788_v5  ;;  %1894 = vmatpush3.bf16.msra.mxu1 %v2045_v60 }
 0x251   : > { %v791_v11 = vmul.f32 0.1, %v758_v9  ;;  %v821_v14 = vmax.f32 %v754_v2, %v789_v8  ;;  %1895 = vmatprep.subr.bf16.mxu1 %v2046_v19 }
 0x252   : > { %v822_v13 = vmax.f32 %v756_v6, %v790_v10 }
 0x253   : > { %v823_v15 = vmax.f32 %v758_v9, %v791_v11 }
 0x254   : > { %v838_v16 = vpack.c.bf16 %v822_v13, %v820_v12  ;;  %1896 = vmatpush3.bf16.msra.mxu1 %v2046_v19 }
 0x255   : > { %v839_v17 = vpack.c.bf16 %v823_v15, %v821_v14  ;;  %1897 = vmatprep.subr.bf16.mxu1 %v2047_v61 }
 0x257   : > { %1063 = vmatprep.mubr.bf16.mxu0 %v839_v17 }
 0x258   : > { %1064 = vmatmul.mubr.bf16.gmra.mrb[44].mxu0 %v838_v16  ;;  %1898 = vmatpush3.bf16.msra.mxu1 %v2047_v61 }
 0x259   : > { %1899 = vmatprep.subr.bf16.mxu1 %v2048_v20 }
 0x25c   : > { %1900 = vmatpush3.bf16.msra.mxu1 %v2048_v20 }
 0x2f3   : > { %v1785_v27 = vpop.f32.mrb[16].mxu0 }
 0x2f4   : > { %v1786_v29 = vpop.f32.mrb[17].mxu0 }
 0x2f5   : > { %v1787_v30 = vadd.f32 %v1786_v29, %v1785_v27  ;;  %v1788_v31 = vpop.f32.mrb[18].mxu0 }
 0x2f6   : > { %v1789_v32 = vpop.f32.mrb[19].mxu0 }
 0x2f7   : > { %v1010_v33 = vadd.f32 %v1787_v30, %v2556_v28  ;;  %v1790_v34 = vadd.f32 %v1789_v32, %v1788_v31 }
 0x2f9   : > { %v1072_v35 = vmul.f32 0.1, %v1010_v33  ;;  %v1013_v36 = vadd.f32 %v1790_v34, %v2556_v28 }
 0x2fb   : > { %v1073_v38 = vmul.f32 0.1, %v1013_v36  ;;  %v1791_v39 = vpop.f32.mrb[20].mxu0  ;;  %v1088_v41 = vmax.f32 %v1010_v33, %v1072_v35 }
 0x2fc   : > { %v1792_v40 = vpop.f32.mrb[21].mxu0 }
 0x2fd   : > { %v1089_v42 = vmax.f32 %v1013_v36, %v1073_v38  ;;  %v1793_v43 = vadd.f32 %v1792_v40, %v1791_v39  ;;  %v1794_v44 = vpop.f32.mrb[22].mxu0 }
 0x2fe   : > { %v1795_v45 = vpop.f32.mrb[23].mxu0 }
 0x2ff   : > { %v1018_v46 = vadd.f32 %v1793_v43, %v2556_v28  ;;  %v1796_v47 = vadd.f32 %v1795_v45, %v1794_v44  ;;  %v1104_v37 = vpack.c.bf16 %v1089_v42, %v1088_v41 }
 0x301   : > { %v1074_v48 = vmul.f32 0.1, %v1018_v46  ;;  %v1021_v49 = vadd.f32 %v1796_v47, %v2556_v28  ;;  %1901 = vmatprep.mubr.bf16.mxu1 %v1104_v37 }
 0x303   : > { %v1075_v50 = vmul.f32 0.1, %v1021_v49  ;;  %v1797_v26 = vpop.f32.mrb[24].mxu0  ;;  %v1090_v52 = vmax.f32 %v1018_v46, %v1074_v48 }
 0x304   : > { %v1798_v51 = vpop.f32.mrb[25].mxu0 }
 0x305   : > { %v1091_v53 = vmax.f32 %v1021_v49, %v1075_v50  ;;  %v1799_v54 = vadd.f32 %v1798_v51, %v1797_v26  ;;  %v1800_v55 = vpop.f32.mrb[26].mxu0 }
 0x306   : > { %v1801_v56 = vpop.f32.mrb[27].mxu0 }
 0x307   : > { %v1105_v57 = vpack.c.bf16 %v1091_v53, %v1090_v52  ;;  %v1026_v58 = vadd.f32 %v1799_v54, %v2556_v28  ;;  %v1802_v59 = vadd.f32 %v1801_v56, %v1800_v55 }
 0x309   : > { %v1076_v62 = vmul.f32 0.1, %v1026_v58  ;;  %v1029_v63 = vadd.f32 %v1802_v59, %v2556_v28  ;;  %1902 = vmatmul.mubr.bf16.vlgmr.msra.gmra.mrb[32].mxu1 %v1105_v57 }
 0x30b   : > { %v1077_v0 = vmul.f32 0.1, %v1029_v63  ;;  %v1803_v1 = vpop.f32.mrb[28].mxu0  ;;  %v1092_v3 = vmax.f32 %v1026_v58, %v1076_v62 }
 0x30c   : > { %v1804_v2 = vpop.f32.mrb[29].mxu0 }
 0x30d   : > { %v1093_v4 = vmax.f32 %v1029_v63, %v1077_v0  ;;  %v1805_v5 = vadd.f32 %v1804_v2, %v1803_v1  ;;  %v1806_v6 = vpop.f32.mrb[30].mxu0 }
 0x30e   : > { %v1807_v7 = vpop.f32.mrb[31].mxu0 }
 0x30f   : > { %v1034_v8 = vadd.f32 %v1805_v5, %v2556_v28  ;;  %v1808_v9 = vadd.f32 %v1807_v7, %v1806_v6  ;;  %v1106_v10 = vpack.c.bf16 %v1093_v4, %v1092_v3  ;;  %v2054_v6 = vld [vmem:[#allocation4 + $0x68] sm:$0xff]   ;;  %v2055_v7 = vld [vmem:[#allocation4 + $0x70] sm:$0xff]  }
 0x310   : > { %1927 = vmatprep.subr.bf16.mxu0 %v2054_v6 }
 0x311   : > { %v1078_v11 = vmul.f32 0.1, %v1034_v8  ;;  %v1037_v12 = vadd.f32 %v1808_v9, %v2556_v28  ;;  %1905 = vmatprep.mubr.bf16.mxu1 %v1106_v10  ;;  %1928 = vmatpush3.bf16.msra.mxu0 %v2054_v6  ;;  %v2574_v9 = vld [vmem:[#allocation6 + $0x4] ss:$0 sm:$0xff] }
 0x312   : > { %1929 = vmatprep.subr.bf16.mxu0 %v2055_v7 }
 0x313   : > { %v1079_v13 = vmul.f32 0.1, %v1037_v12  ;;  %v1809_v14 = vpop.f32.mrb[32].mxu0  ;;  %v1094_v16 = vmax.f32 %v1034_v8, %v1078_v11  ;;  %v2056_v8 = vld [vmem:[#allocation4 + $0x78] sm:$0xff]  }
 0x314   : > { %v1810_v15 = vpop.f32.mrb[33].mxu0 }
 0x315   : > { %v1095_v17 = vmax.f32 %v1037_v12, %v1079_v13  ;;  %v1811_v18 = vadd.f32 %v1810_v15, %v1809_v14  ;;  %v1812_v60 = vpop.f32.mrb[34].mxu0  ;;  %1930 = vmatpush3.bf16.msra.mxu0 %v2055_v7 }
 0x316   : > { %v1813_v19 = vpop.f32.mrb[35].mxu0  ;;  %1931 = vmatprep.subr.bf16.mxu0 %v2056_v8 }
 0x317   : > { %v1042_v61 = vadd.f32 %v1811_v18, %v2556_v28  ;;  %v1814_v20 = vadd.f32 %v1813_v19, %v1812_v60  ;;  %v1107_v21 = vpack.c.bf16 %v1095_v17, %v1094_v16 }
 0x319   : > { %v1080_v22 = vmul.f32 0.1, %v1042_v61  ;;  %v1045_v23 = vadd.f32 %v1814_v20, %v2556_v28  ;;  %1906 = vmatmul.mubr.bf16.gmra.mrb[36].mxu1 %v1107_v21  ;;  %1932 = vmatpush3.bf16.msra.mxu0 %v2056_v8 }
 0x31b   : > { %v1081_v24 = vmul.f32 0.1, %v1045_v23  ;;  %v1815_v25 = vpop.f32.mrb[36].mxu0  ;;  %v1096_v29 = vmax.f32 %v1042_v61, %v1080_v22 }
 0x31c   : > { %v1816_v27 = vpop.f32.mrb[37].mxu0 }
 0x31d   : > { %v1097_v30 = vmax.f32 %v1045_v23, %v1081_v24  ;;  %v1817_v31 = vadd.f32 %v1816_v27, %v1815_v25  ;;  %v1818_v32 = vpop.f32.mrb[38].mxu0 }
 0x31e   : > { %v1819_v33 = vpop.f32.mrb[39].mxu0 }
 0x31f   : > { %v1050_v34 = vadd.f32 %v1817_v31, %v2556_v28  ;;  %v1820_v35 = vadd.f32 %v1819_v33, %v1818_v32  ;;  %v1108_v36 = vpack.c.bf16 %v1097_v30, %v1096_v29 }
 0x321   : > { %v1082_v38 = vmul.f32 0.1, %v1050_v34  ;;  %v1053_v39 = vadd.f32 %v1820_v35, %v2556_v28  ;;  %1909 = vmatprep.mubr.bf16.mxu1 %v1108_v36 }
 0x323   : > { %v1083_v40 = vmul.f32 0.1, %v1053_v39  ;;  %v1821_v41 = vpop.f32.mrb[40].mxu0  ;;  %v1098_v43 = vmax.f32 %v1050_v34, %v1082_v38 }
 0x324   : > { %v1822_v42 = vpop.f32.mrb[41].mxu0 }
 0x325   : > { %v1099_v44 = vmax.f32 %v1053_v39, %v1083_v40  ;;  %v1823_v45 = vadd.f32 %v1822_v42, %v1821_v41  ;;  %v1824_v46 = vpop.f32.mrb[42].mxu0 }
 0x326   : > { %v1825_v47 = vpop.f32.mrb[43].mxu0 }
 0x327   : > { %v1058_v37 = vadd.f32 %v1823_v45, %v2556_v28  ;;  %v1826_v48 = vadd.f32 %v1825_v47, %v1824_v46  ;;  %v1109_v49 = vpack.c.bf16 %v1099_v44, %v1098_v43 }
 0x329   : > { %v1084_v50 = vmul.f32 0.1, %v1058_v37  ;;  %v1061_v26 = vadd.f32 %v1826_v48, %v2556_v28  ;;  %1910 = vmatmul.mubr.bf16.gmra.mrb[40].mxu1 %v1109_v49 }
 0x32b   : > { %v1085_v51 = vmul.f32 0.1, %v1061_v26  ;;  %v1827_v52 = vpop.f32.mrb[44].mxu0  ;;  %v1100_v54 = vmax.f32 %v1058_v37, %v1084_v50 }
 0x32c   : > { %v1828_v53 = vpop.f32.mrb[45].mxu0 }
 0x32d   : > { %v1101_v55 = vmax.f32 %v1061_v26, %v1085_v51  ;;  %v1829_v56 = vadd.f32 %v1828_v53, %v1827_v52  ;;  %v1830_v57 = vpop.f32.mrb[46].mxu0 }
 0x32e   : > { %v1831_v58 = vpop.f32.mrb[47].mxu0 }
 0x32f   : > { %v1066_v59 = vadd.f32 %v1829_v56, %v2556_v28  ;;  %v1832_v62 = vadd.f32 %v1831_v58, %v1830_v57  ;;  %v1110_v63 = vpack.c.bf16 %v1101_v55, %v1100_v54 }
 0x331   : > { %v1086_v0 = vmul.f32 0.1, %v1066_v59  ;;  %v1069_v1 = vadd.f32 %v1832_v62, %v2556_v28  ;;  %1913 = vmatprep.mubr.bf16.mxu1 %v1110_v63 }
 0x333   : > { %v1087_v2 = vmul.f32 0.1, %v1069_v1  ;;  %v1102_v3 = vmax.f32 %v1066_v59, %v1086_v0 }
 0x335   : > { %v1103_v4 = vmax.f32 %v1069_v1, %v1087_v2 }
 0x337   : > { %v1111_v5 = vpack.c.bf16 %v1103_v4, %v1102_v3 }
 0x339   : > { %1914 = vmatmul.mubr.bf16.gmra.mrb[44].mxu1 %v1111_v5 }
 0x3dc   : > { %v1903_v10 = vpop.f32.mrb[32].mxu1 }
 0x3dd   : > { %v1226_v28 = vadd.f32 %v1903_v10, %v2574_v9  ;;  %v1217_v11 = vpop.f32.mrb[33].mxu1 }
 0x3de   : > { %v1218_v12 = vadd.f32 %v2574_v9, %v1217_v11  ;;  %v1904_v13 = vpop.f32.mrb[34].mxu1 }
 0x3df   : > { %v1282_v14 = vmul.f32 0.1, %v1226_v28  ;;  %v1229_v15 = vadd.f32 %v1904_v13, %v2574_v9  ;;  %v1220_v16 = vpop.f32.mrb[35].mxu1 }
 0x3e0   : > { %v1280_v17 = vmul.f32 0.1, %v1218_v12  ;;  %v1221_v18 = vadd.f32 %v2574_v9, %v1220_v16 }
 0x3e1   : > { %v1283_v60 = vmul.f32 0.1, %v1229_v15  ;;  %v1298_v61 = vmax.f32 %v1226_v28, %v1282_v14 }
 0x3e2   : > { %v1281_v19 = vmul.f32 0.1, %v1221_v18  ;;  %v1296_v21 = vmax.f32 %v1218_v12, %v1280_v17 }
 0x3e3   : > { %v1299_v20 = vmax.f32 %v1229_v15, %v1283_v60 }
 0x3e4   : > { %v1297_v22 = vmax.f32 %v1221_v18, %v1281_v19  ;;  %v2592_v18 = vld [vmem:[#allocation6 + $0x5] ss:$0 sm:$0xff] }
 0x3e5   : > { %v1313_v23 = vpack.c.bf16 %v1299_v20, %v1298_v61 }
 0x3e6   : > { %v1312_v24 = vpack.c.bf16 %v1297_v22, %v1296_v21 }
 0x3e8   : > { %1933 = vmatprep.mubr.bf16.mxu0 %v1312_v24 }
 0x3e9   : > { %1934 = vmatmul.mubr.bf16.vlgmr.msra.gmra.mrb[48].mxu0 %v1313_v23 }
 0x3ec   : > { %v1907_v25 = vpop.f32.mrb[36].mxu1 }
 0x3ed   : > { %v1242_v27 = vadd.f32 %v1907_v25, %v2574_v9  ;;  %v1233_v29 = vpop.f32.mrb[37].mxu1 }
 0x3ee   : > { %v1234_v30 = vadd.f32 %v2574_v9, %v1233_v29  ;;  %v1908_v31 = vpop.f32.mrb[38].mxu1 }
 0x3ef   : > { %v1286_v32 = vmul.f32 0.1, %v1242_v27  ;;  %v1245_v33 = vadd.f32 %v1908_v31, %v2574_v9  ;;  %v1236_v34 = vpop.f32.mrb[39].mxu1 }
 0x3f0   : > { %v1284_v35 = vmul.f32 0.1, %v1234_v30  ;;  %v1237_v36 = vadd.f32 %v2574_v9, %v1236_v34 }
 0x3f1   : > { %v1287_v38 = vmul.f32 0.1, %v1245_v33  ;;  %v1302_v40 = vmax.f32 %v1242_v27, %v1286_v32 }
 0x3f2   : > { %v1285_v39 = vmul.f32 0.1, %v1237_v36  ;;  %v1300_v42 = vmax.f32 %v1234_v30, %v1284_v35 }
 0x3f3   : > { %v1303_v41 = vmax.f32 %v1245_v33, %v1287_v38 }
 0x3f4   : > { %v1301_v43 = vmax.f32 %v1237_v36, %v1285_v39 }
 0x3f5   : > { %v1315_v44 = vpack.c.bf16 %v1303_v41, %v1302_v40 }
 0x3f6   : > { %v1314_v45 = vpack.c.bf16 %v1301_v43, %v1300_v42 }
 0x3f8   : > { %1937 = vmatprep.mubr.bf16.mxu0 %v1314_v45 }
 0x3f9   : > { %1938 = vmatmul.mubr.bf16.gmra.mrb[52].mxu0 %v1315_v44 }
 0x3fc   : > { %v1911_v46 = vpop.f32.mrb[40].mxu1 }
 0x3fd   : > { %v1258_v47 = vadd.f32 %v1911_v46, %v2574_v9  ;;  %v1249_v37 = vpop.f32.mrb[41].mxu1 }
 0x3fe   : > { %v1250_v48 = vadd.f32 %v2574_v9, %v1249_v37  ;;  %v1912_v49 = vpop.f32.mrb[42].mxu1 }
 0x3ff   : > { %v1290_v50 = vmul.f32 0.1, %v1258_v47  ;;  %v1261_v26 = vadd.f32 %v1912_v49, %v2574_v9  ;;  %v1252_v51 = vpop.f32.mrb[43].mxu1 }
 0x400   : > { %v1288_v52 = vmul.f32 0.1, %v1250_v48  ;;  %v1253_v53 = vadd.f32 %v2574_v9, %v1252_v51 }
 0x401   : > { %v1291_v54 = vmul.f32 0.1, %v1261_v26  ;;  %v1306_v56 = vmax.f32 %v1258_v47, %v1290_v50 }
 0x402   : > { %v1289_v55 = vmul.f32 0.1, %v1253_v53  ;;  %v1304_v58 = vmax.f32 %v1250_v48, %v1288_v52 }
 0x403   : > { %v1307_v57 = vmax.f32 %v1261_v26, %v1291_v54 }
 0x404   : > { %v1305_v59 = vmax.f32 %v1253_v53, %v1289_v55 }
 0x405   : > { %v1317_v62 = vpack.c.bf16 %v1307_v57, %v1306_v56 }
 0x406   : > { %v1316_v63 = vpack.c.bf16 %v1305_v59, %v1304_v58 }
 0x408   : > { %1941 = vmatprep.mubr.bf16.mxu0 %v1316_v63 }
 0x409   : > { %1942 = vmatmul.mubr.bf16.gmra.mrb[56].mxu0 %v1317_v62 }
 0x40c   : > { %v1915_v0 = vpop.f32.mrb[44].mxu1 }
 0x40d   : > { %v1274_v1 = vadd.f32 %v1915_v0, %v2574_v9  ;;  %v1265_v2 = vpop.f32.mrb[45].mxu1 }
 0x40e   : > { %v1266_v3 = vadd.f32 %v2574_v9, %v1265_v2  ;;  %v1916_v4 = vpop.f32.mrb[46].mxu1 }
 0x40f   : > { %v1294_v5 = vmul.f32 0.1, %v1274_v1  ;;  %v1277_v6 = vadd.f32 %v1916_v4, %v2574_v9  ;;  %v1268_v7 = vpop.f32.mrb[47].mxu1 }
 0x410   : > { %v1292_v8 = vmul.f32 0.1, %v1266_v3  ;;  %v1269_v10 = vadd.f32 %v2574_v9, %v1268_v7 }
 0x411   : > { %v1295_v28 = vmul.f32 0.1, %v1277_v6  ;;  %v1310_v12 = vmax.f32 %v1274_v1, %v1294_v5 }
 0x412   : > { %v1293_v11 = vmul.f32 0.1, %v1269_v10  ;;  %v1308_v14 = vmax.f32 %v1266_v3, %v1292_v8 }
 0x413   : > { %v1311_v13 = vmax.f32 %v1277_v6, %v1295_v28 }
 0x414   : > { %v1309_v15 = vmax.f32 %v1269_v10, %v1293_v11 }
 0x415   : > { %v1319_v16 = vpack.c.bf16 %v1311_v13, %v1310_v12 }
 0x416   : > { %v1318_v17 = vpack.c.bf16 %v1309_v15, %v1308_v14 }
 0x418   : > { %1945 = vmatprep.mubr.bf16.mxu0 %v1318_v17 }
 0x419   : > { %1946 = vmatmul.mubr.bf16.gmra.mrb[60].mxu0 %v1319_v16 }
 0x4bc   : > { %v1935_v60 = vpop.f32.mrb[48].mxu0 }
 0x4bd   : > { %v1435_v19 = vadd.f32 %v1935_v60, %v2592_v18  ;;  %v1426_v61 = vpop.f32.mrb[49].mxu0 }
 0x4be   : > { %v1427_v20 = vadd.f32 %v2592_v18, %v1426_v61  ;;  %v1936_v21 = vpop.f32.mrb[50].mxu0 }
 0x4bf   : > { %v1491_v9 = vsub.f32 0.0, %v1435_v19  ;;  %v1438_v22 = vadd.f32 %v1936_v21, %v2592_v18  ;;  %v1429_v23 = vpop.f32.mrb[51].mxu0 }
 0x4c0   : > { %v1489_v24 = vsub.f32 0.0, %v1427_v20  ;;  %v1430_v25 = vadd.f32 %v2592_v18, %v1429_v23 }
 0x4c1   : > { %v1509_v27 = vmul.f32 1.442695, %v1491_v9  ;;  %v1492_v29 = vsub.f32 0.0, %v1438_v22 }
 0x4c2   : > { %v1505_v30 = vmul.f32 1.442695, %v1489_v24  ;;  %v1490_v31 = vsub.f32 0.0, %v1430_v25 }
 0x4c3   : > { %2057 = vpow2.f32 %v1509_v27  ;;  %v1511_v32 = vmul.f32 1.442695, %v1492_v29 }
 0x4c4   : > { %2059 = vpow2.f32 %v1505_v30  ;;  %v1507_v33 = vmul.f32 1.442695, %v1490_v31 }
 0x4c5   : > { %2061 = vpow2.f32 %v1511_v32 }
 0x4c6   : > { %2063 = vpow2.f32 %v1507_v33 }
 0x4cc   : > { %v1939_v34 = vpop.f32.mrb[52].mxu0 }
 0x4cd   : > { %v2058_v35 = vpop.eup %2057  ;;  %v1451_v36 = vadd.f32 %v1939_v34, %v2592_v18  ;;  %v1442_v38 = vpop.f32.mrb[53].mxu0 }
 0x4ce   : > { %v2060_v39 = vpop.eup %2059  ;;  %v1539_v40 = vadd.f32 1.0, %v2058_v35  ;;  %v1443_v41 = vadd.f32 %v2592_v18, %v1442_v38  ;;  %v1940_v42 = vpop.f32.mrb[54].mxu0 }
 0x4cf   : > { %v2062_v43 = vpop.eup %2061  ;;  %v1537_v44 = vadd.f32 1.0, %v2060_v39  ;;  %v1495_v45 = vsub.f32 0.0, %v1451_v36  ;;  %v1454_v46 = vadd.f32 %v1940_v42, %v2592_v18  ;;  %v1445_v47 = vpop.f32.mrb[55].mxu0 }
 0x4d0   : > { %v2064_v37 = vpop.eup %2063  ;;  %2065 = vrcp.f32 %v1539_v40  ;;  %v1540_v48 = vadd.f32 1.0, %v2062_v43  ;;  %v1493_v49 = vsub.f32 0.0, %v1443_v41  ;;  %v1446_v50 = vadd.f32 %v2592_v18, %v1445_v47 }
 0x4d1   : > { %2067 = vrcp.f32 %v1537_v44  ;;  %v1538_v26 = vadd.f32 1.0, %v2064_v37  ;;  %v1517_v51 = vmul.f32 1.442695, %v1495_v45  ;;  %v1496_v52 = vsub.f32 0.0, %v1454_v46 }
 0x4d2   : > { %2069 = vrcp.f32 %v1540_v48  ;;  %v1513_v53 = vmul.f32 1.442695, %v1493_v49  ;;  %v1494_v54 = vsub.f32 0.0, %v1446_v50 }
 0x4d3   : > { %2071 = vrcp.f32 %v1538_v26  ;;  %v1519_v55 = vmul.f32 1.442695, %v1496_v52 }
 0x4d4   : > { %2073 = vpow2.f32 %v1517_v51  ;;  %v1515_v56 = vmul.f32 1.442695, %v1494_v54 }
 0x4d5   : > { %2075 = vpow2.f32 %v1513_v53 }
 0x4d6   : > { %2077 = vpow2.f32 %v1519_v55 }
 0x4d7   : > { %2079 = vpow2.f32 %v1515_v56 }
 0x4da   : > { %v2066_v57 = vpop.eup %2065 }
 0x4db   : > { %v2068_v58 = vpop.eup %2067  ;;  %1571 = vst [vmem:[%s2606_s9 + $0x10] sm:$0xff] %v2066_v57 }
 0x4dc   : > { %v2070_v59 = vpop.eup %2069  ;;  %1569 = vst [vmem:[%s2606_s9] sm:$0xff] %v2068_v58  ;;  %v1943_v62 = vpop.f32.mrb[56].mxu0 }
 0x4dd   : > { %v2072_v63 = vpop.eup %2071  ;;  %1572 = vst [vmem:[%s2606_s9 + $0x18] sm:$0xff] %v2070_v59  ;;  %v1467_v0 = vadd.f32 %v1943_v62, %v2592_v18  ;;  %v1458_v1 = vpop.f32.mrb[57].mxu0 }
 0x4de   : > { %v2074_v2 = vpop.eup %2073  ;;  %1570 = vst [vmem:[%s2606_s9 + $0x8] sm:$0xff] %v2072_v63  ;;  %v1459_v3 = vadd.f32 %v2592_v18, %v1458_v1  ;;  %v1944_v4 = vpop.f32.mrb[58].mxu0 }
 0x4df   : > { %v2076_v5 = vpop.eup %2075  ;;  %v1543_v6 = vadd.f32 1.0, %v2074_v2  ;;  %v1499_v7 = vsub.f32 0.0, %v1467_v0  ;;  %v1470_v8 = vadd.f32 %v1944_v4, %v2592_v18  ;;  %v1461_v10 = vpop.f32.mrb[59].mxu0 }
 0x4e0   : > { %v2078_v28 = vpop.eup %2077  ;;  %v1541_v11 = vadd.f32 1.0, %v2076_v5  ;;  %v1497_v12 = vsub.f32 0.0, %v1459_v3  ;;  %v1462_v13 = vadd.f32 %v2592_v18, %v1461_v10 }
 0x4e1   : > { %v2080_v14 = vpop.eup %2079  ;;  %2081 = vrcp.f32 %v1543_v6  ;;  %v1544_v15 = vadd.f32 1.0, %v2078_v28  ;;  %v1525_v16 = vmul.f32 1.442695, %v1499_v7  ;;  %v1500_v17 = vsub.f32 0.0, %v1470_v8 }
 0x4e2   : > { %2083 = vrcp.f32 %v1541_v11  ;;  %v1542_v60 = vadd.f32 1.0, %v2080_v14  ;;  %v1521_v19 = vmul.f32 1.442695, %v1497_v12  ;;  %v1498_v61 = vsub.f32 0.0, %v1462_v13 }
 0x4e3   : > { %2085 = vrcp.f32 %v1544_v15  ;;  %v1527_v20 = vmul.f32 1.442695, %v1500_v17 }
 0x4e4   : > { %2087 = vrcp.f32 %v1542_v60  ;;  %v1523_v21 = vmul.f32 1.442695, %v1498_v61 }
 0x4e5   : > { %2089 = vpow2.f32 %v1525_v16 }
 0x4e6   : > { %2091 = vpow2.f32 %v1521_v19 }
 0x4e7   : > { %2093 = vpow2.f32 %v1527_v20 }
 0x4e8   : > { %2095 = vpow2.f32 %v1523_v21 }
 0x4eb   : > { %v2082_v9 = vpop.eup %2081 }
 0x4ec   : > { %v2084_v22 = vpop.eup %2083  ;;  %1575 = vst [vmem:[%s2606_s9 + $0x30] sm:$0xff] %v2082_v9  ;;  %v1947_v23 = vpop.f32.mrb[60].mxu0 }
 0x4ed   : > { %v2086_v24 = vpop.eup %2085  ;;  %1573 = vst [vmem:[%s2606_s9 + $0x20] sm:$0xff] %v2084_v22  ;;  %v1483_v25 = vadd.f32 %v1947_v23, %v2592_v18  ;;  %v1474_v27 = vpop.f32.mrb[61].mxu0 }
 0x4ee   : > { %v2088_v29 = vpop.eup %2087  ;;  %1576 = vst [vmem:[%s2606_s9 + $0x38] sm:$0xff] %v2086_v24  ;;  %v1475_v30 = vadd.f32 %v2592_v18, %v1474_v27  ;;  %v1948_v31 = vpop.f32.mrb[62].mxu0 }
 0x4ef   : > { %v2090_v32 = vpop.eup %2089  ;;  %1574 = vst [vmem:[%s2606_s9 + $0x28] sm:$0xff] %v2088_v29  ;;  %v1503_v33 = vsub.f32 0.0, %v1483_v25  ;;  %v1486_v34 = vadd.f32 %v1948_v31, %v2592_v18  ;;  %v1477_v35 = vpop.f32.mrb[63].mxu0 }
 0x4f0   : > { %v2092_v36 = vpop.eup %2091  ;;  %v1547_v38 = vadd.f32 1.0, %v2090_v32  ;;  %v1501_v39 = vsub.f32 0.0, %v1475_v30  ;;  %v1478_v40 = vadd.f32 %v2592_v18, %v1477_v35 }
 0x4f1   : > { %v2094_v41 = vpop.eup %2093  ;;  %v1545_v42 = vadd.f32 1.0, %v2092_v36  ;;  %v1504_v43 = vsub.f32 0.0, %v1486_v34  ;;  %v1533_v46 = vmul.f32 1.442695, %v1503_v33 }
 0x4f2   : > { %v2096_v44 = vpop.eup %2095  ;;  %2097 = vrcp.f32 %v1547_v38  ;;  %v1548_v45 = vadd.f32 1.0, %v2094_v41  ;;  %v1502_v47 = vsub.f32 0.0, %v1478_v40  ;;  %v1529_v48 = vmul.f32 1.442695, %v1501_v39 }
 0x4f3   : > { %2099 = vrcp.f32 %v1545_v42  ;;  %v1546_v37 = vadd.f32 1.0, %v2096_v44  ;;  %v1535_v49 = vmul.f32 1.442695, %v1504_v43 }
 0x4f4   : > { %2101 = vrcp.f32 %v1548_v45  ;;  %v1531_v50 = vmul.f32 1.442695, %v1502_v47 }
 0x4f5   : > { %2103 = vrcp.f32 %v1546_v37 }
 0x4f6   : > { %2105 = vpow2.f32 %v1533_v46 }
 0x4f7   : > { %2107 = vpow2.f32 %v1529_v48 }
 0x4f8   : > { %2109 = vpow2.f32 %v1535_v49 }
 0x4f9   : > { %2111 = vpow2.f32 %v1531_v50 }
 0x4fc   : > { %v2098_v18 = vpop.eup %2097 }
 0x4fd   : > { %v2100_v26 = vpop.eup %2099  ;;  %1579 = vst [vmem:[%s2606_s9 + $0x50] sm:$0xff] %v2098_v18 }
 0x4fe   : > { %v2102_v51 = vpop.eup %2101  ;;  %1577 = vst [vmem:[%s2606_s9 + $0x40] sm:$0xff] %v2100_v26 }
 0x4ff   : > { %v2104_v52 = vpop.eup %2103  ;;  %1580 = vst [vmem:[%s2606_s9 + $0x58] sm:$0xff] %v2102_v51 }
 0x500   : > { %v2106_v53 = vpop.eup %2105  ;;  %1578 = vst [vmem:[%s2606_s9 + $0x48] sm:$0xff] %v2104_v52 }
 0x501   : > { %v2108_v54 = vpop.eup %2107  ;;  %v1551_v55 = vadd.f32 1.0, %v2106_v53 }
 0x502   : > { %v2110_v56 = vpop.eup %2109  ;;  %v1549_v57 = vadd.f32 1.0, %v2108_v54 }
 0x503   : > { %v2112_v58 = vpop.eup %2111  ;;  %2113 = vrcp.f32 %v1551_v55  ;;  %v1552_v59 = vadd.f32 1.0, %v2110_v56 }
 0x504   : > { %2115 = vrcp.f32 %v1549_v57  ;;  %v1550_v62 = vadd.f32 1.0, %v2112_v58 }
 0x505   : > { %2117 = vrcp.f32 %v1552_v59 }
 0x506   : > { %2119 = vrcp.f32 %v1550_v62 }
 0x50d   : > { %v2114_v63 = vpop.eup %2113 }
 0x50e   : > { %v2116_v0 = vpop.eup %2115  ;;  %1583 = vst [vmem:[%s2606_s9 + $0x70] sm:$0xff] %v2114_v63 }
 0x50f   : > { %v2118_v1 = vpop.eup %2117  ;;  %1581 = vst [vmem:[%s2606_s9 + $0x60] sm:$0xff] %v2116_v0 }
 0x510   : > { %v2120_v2 = vpop.eup %2119  ;;  %1584 = vst [vmem:[%s2606_s9 + $0x78] sm:$0xff] %v2118_v1 }
 0x511   : > { %1582 = vst [vmem:[%s2606_s9 + $0x68] sm:$0xff] %v2120_v2 }
 0x512 PF: > { %s18_s21 = sadd.s32 1, %s2219_s21  }
 0x513   : > { %p15_p5 = scmp.ge.s32.totalorder %s18_s21, 4  }
 0x515   :  { %17 = sbr.rel (!%p15_p5) target bundleno = 2 (0x2), region = 88 }
 0x51c   :  { %1607 = vsyncpa [#allocation3], 1 }
 0x51d   :  { %1609 = vsyncpa [#allocation3 + $0x1], 1 }
 0x51e   :  { %1610 = vsyncpa [#allocation5], 1 }

</bundles_post_ra>
